<compile_context>
chip_gen: v6e
topology: v6e:2x2x1
jax: 0.10.0
libtpu: 0.0.40
codegen_flags: <defaults>
</compile_context>

<pallas_src>
import jax
import jax.numpy as jnp
from jax import lax
from jax.experimental import pallas as pl
from jax.experimental.pallas import tpu as pltpu


# ----------------------------- kernel --------------------------------------- #

def _make_trans_block_kernel(eps, n_win, cin, cout):
    def kernel(x_ref, p_ref, o_ref):
        # x_ref: (n_win*cin, L), rows ordered [win0: c0..c_{cin-1}, win1: ..., ...]
        # p_ref: (rows, cin+1): cols [0:cin] = conv_w * 0.25 (rows 0..cout-1),
        #        col cin = [gamma(0..cin-1); beta(cin..2cin-1)]
        R, L = x_ref.shape
        inv_count = 1.0 / float(n_win * L)               # 1 / (N*H*W)

        x = x_ref[...]                                   # (R, L) f32 — 2 full vregs

        # ---- BatchNorm2d batch statistics (two-pass: mean, then centered variance) ----
        row_sum = jnp.sum(x, axis=1, keepdims=True)      # (R, 1)   lane reduce (XLU)
        ch_sum = row_sum[0:cin]
        for p in range(1, n_win):
            ch_sum = ch_sum + row_sum[p * cin:(p + 1) * cin]
        mean_c = ch_sum * inv_count                      # (cin, 1)
        mean = jnp.concatenate([mean_c] * n_win, axis=0)  # (R, 1)

        xc = x - mean                                    # (R, L)
        sq_sum = jnp.sum(xc * xc, axis=1, keepdims=True)  # (R, 1)
        ch_sq = sq_sum[0:cin]
        for p in range(1, n_win):
            ch_sq = ch_sq + sq_sum[p * cin:(p + 1) * cin]
        inv_std_c = lax.rsqrt(ch_sq * inv_count + eps)    # (cin, 1)  biased var, eps inside

        gamma_c = p_ref[0:cin, cin:cin + 1]               # (cin, 1)
        beta_c = p_ref[cin:2 * cin, cin:cin + 1]          # (cin, 1)
        scale = jnp.concatenate([gamma_c * inv_std_c] * n_win, axis=0)  # (R, 1)
        shift = jnp.concatenate([beta_c] * n_win, axis=0)               # (R, 1)

        # ---- BN-apply + ReLU (lane-dense VPU ops on full vregs) ----
        a = jnp.maximum(xc * scale + shift, 0.0)          # (R, L)

        # ---- AvgPool2d(2): sum over the n_win window groups (1/4 folded into conv w) ----
        pooled = a[0:cin]
        for p in range(1, n_win):
            pooled = pooled + a[p * cin:(p + 1) * cin]    # (cin, L)

        # ---- 1x1 conv as unrolled VPU broadcast multiply-adds (K = cin is tiny) ----
        w = p_ref[0:cout, 0:cin]                          # (cout, cin), already *0.25
        acc = w[:, 0:1] * pooled[0:1, :]                  # (cout, L)
        for c in range(1, cin):
            acc = acc + w[:, c:c + 1] * pooled[c:c + 1, :]

        o_ref[...] = acc.astype(o_ref.dtype)              # lane-dense (cout, 128) store
    return kernel


# ----------------------------- wrapper --------------------------------------- #

def trans_block_forward(x_nchw, gamma, beta, conv_w, eps=1e-5):
    """Forward pass of Trans_Block.  x_nchw: (N, Cin, H, W) f32 -> (N, Cout, H//2, W//2)."""
    N, Cin, H, W = x_nchw.shape
    Cout = conv_w.shape[0]
    Ho, Wo = H // 2, W // 2
    L = N * Ho * Wo
    n_win = 4

    # Layout plumbing (plain XLA, fused under jit): expose the 2x2 pool window on the
    # sublane axis (packed with channels) and flatten (N, Ho, Wo) lane-dense.
    x_win = (x_nchw.astype(jnp.float32)
             .reshape(N, Cin, Ho, 2, Wo, 2)
             .transpose(3, 5, 1, 0, 2, 4)                 # (ph, pw, c, n, oh, ow)
             .reshape(n_win * Cin, L))                    # (16, 128)

    # One merged parameter tile: conv weight (with the AvgPool 1/4 folded in) + gamma/beta.
    rows = max(Cout, 2 * Cin)
    w_scaled = conv_w[:, :, 0, 0].astype(jnp.float32) * 0.25          # (Cout, Cin)
    w_pad = jnp.zeros((rows, Cin), jnp.float32).at[:Cout].set(w_scaled)
    gb = jnp.zeros((rows, 1), jnp.float32).at[:2 * Cin, 0].set(
        jnp.concatenate([gamma.astype(jnp.float32), beta.astype(jnp.float32)]))
    params = jnp.concatenate([w_pad, gb], axis=1)                      # (rows, Cin+1)

    out_flat = pl.pallas_call(
        _make_trans_block_kernel(eps, n_win, Cin, Cout),
        out_shape=jax.ShapeDtypeStruct((Cout, L), jnp.float32),
        in_specs=[pl.BlockSpec(memory_space=pltpu.MemorySpace.VMEM),
                  pl.BlockSpec(memory_space=pltpu.MemorySpace.VMEM)],
        out_specs=pl.BlockSpec(memory_space=pltpu.MemorySpace.VMEM),
    )(x_win, params)

    # (Cout, N*Ho*Wo) -> (N, Cout, Ho, Wo)
    return out_flat.reshape(Cout, N, Ho, Wo).transpose(1, 0, 2, 3)


# ----------------------------- reference ------------------------------------- #

def trans_block_reference(x, gamma, beta, conv_w, eps=1e-5):
    """Pure-JAX reference, NCHW, matching PyTorch training-mode forward."""
    mean = jnp.mean(x, axis=(0, 2, 3), keepdims=True)
    var = jnp.var(x, axis=(0, 2, 3), keepdims=True)   # biased variance (as BN uses)
    xn = (x - mean) / jnp.sqrt(var + eps)
    xn = xn * gamma[None, :, None, None] + beta[None, :, None, None]
    a = jnp.maximum(xn, 0.0)
    y = jnp.einsum('oc,nchw->nohw', conv_w[:, :, 0, 0], a)
    N, Co, H, W = y.shape
    return y.reshape(N, Co, H // 2, 2, W // 2, 2).mean(axis=(3, 5))


# ------------------------------- main ----------------------------------------- #

if __name__ == "__main__":
    # Module hyper-params (consistent with Trans_Block(in_channel=4, out_channel=8))
    N, Cin, Cout, H, W = 2, 4, 8, 16, 16

    key = jax.random.PRNGKey(0)
    kx, kw, kg, kb = jax.random.split(key, 4)

    x = jax.random.normal(kx, (N, Cin, H, W), dtype=jnp.float32)
    conv_w = jax.random.normal(kw, (Cout, Cin, 1, 1), dtype=jnp.float32) * 0.1
    gamma = 1.0 + 0.1 * jax.random.normal(kg, (Cin,), dtype=jnp.float32)
    beta = 0.1 * jax.random.normal(kb, (Cin,), dtype=jnp.float32)

    fwd = jax.jit(trans_block_forward)   # fuses the wrapper-side layout ops with the call
    out = jax.block_until_ready(fwd(x, gamma, beta, conv_w))

    ref = trans_block_reference(x, gamma, beta, conv_w)
    assert out.shape == (N, Cout, H // 2, W // 2), out.shape
    max_err = float(jnp.max(jnp.abs(out - ref)))
    assert jnp.allclose(out, ref, atol=1e-4, rtol=1e-4), max_err

    print("KERNEL_OK")
</pallas_src>

<mosaic_0001>
module attributes {stable_mosaic.version = 11 : i64} {
  func.func @kernel(%arg0: memref<16x128xf32, #tpu.memory_space<vmem>>, %arg1: memref<8x5xf32, #tpu.memory_space<vmem>>, %arg2: memref<8x128xf32, #tpu.memory_space<vmem>>) attributes {dimension_semantics = [], scalar_prefetch = 0 : i64, scratch_operands = 0 : i64, tpu.core_type = #tpu.core_type<tc>} {
    %c0 = arith.constant 0 : index
    %c0_0 = arith.constant 0 : index
    %0 = vector.load %arg0[%c0, %c0_0] : memref<16x128xf32, #tpu.memory_space<vmem>>, vector<16x128xf32>
    %cst = arith.constant dense<0.000000e+00> : vector<16xf32>
    %1 = vector.multi_reduction <add>, %0, %cst [1] : vector<16x128xf32> to vector<16xf32>
    %2 = vector.shape_cast %1 : vector<16xf32> to vector<16x1xf32>
    %3 = vector.extract_strided_slice %2 {offsets = [0, 0], sizes = [4, 1], strides = [1, 1]} : vector<16x1xf32> to vector<4x1xf32>
    %4 = vector.extract_strided_slice %2 {offsets = [4, 0], sizes = [4, 1], strides = [1, 1]} : vector<16x1xf32> to vector<4x1xf32>
    %5 = arith.addf %3, %4 : vector<4x1xf32>
    %6 = vector.extract_strided_slice %2 {offsets = [8, 0], sizes = [4, 1], strides = [1, 1]} : vector<16x1xf32> to vector<4x1xf32>
    %7 = arith.addf %5, %6 : vector<4x1xf32>
    %8 = vector.extract_strided_slice %2 {offsets = [12, 0], sizes = [4, 1], strides = [1, 1]} : vector<16x1xf32> to vector<4x1xf32>
    %9 = arith.addf %7, %8 : vector<4x1xf32>
    %cst_1 = arith.constant 0.001953125 : f32
    %10 = vector.broadcast %cst_1 : f32 to vector<4x1xf32>
    %11 = arith.mulf %9, %10 : vector<4x1xf32>
    %12 = tpu.concatenate %11, %11, %11, %11 in 0 : vector<4x1xf32>, vector<4x1xf32>, vector<4x1xf32>, vector<4x1xf32> -> vector<16x1xf32>
    %13 = vector.broadcast %12 : vector<16x1xf32> to vector<16x128xf32>
    %14 = arith.subf %0, %13 : vector<16x128xf32>
    %15 = arith.mulf %14, %14 : vector<16x128xf32>
    %cst_2 = arith.constant dense<0.000000e+00> : vector<16xf32>
    %16 = vector.multi_reduction <add>, %15, %cst_2 [1] : vector<16x128xf32> to vector<16xf32>
    %17 = vector.shape_cast %16 : vector<16xf32> to vector<16x1xf32>
    %18 = vector.extract_strided_slice %17 {offsets = [0, 0], sizes = [4, 1], strides = [1, 1]} : vector<16x1xf32> to vector<4x1xf32>
    %19 = vector.extract_strided_slice %17 {offsets = [4, 0], sizes = [4, 1], strides = [1, 1]} : vector<16x1xf32> to vector<4x1xf32>
    %20 = arith.addf %18, %19 : vector<4x1xf32>
    %21 = vector.extract_strided_slice %17 {offsets = [8, 0], sizes = [4, 1], strides = [1, 1]} : vector<16x1xf32> to vector<4x1xf32>
    %22 = arith.addf %20, %21 : vector<4x1xf32>
    %23 = vector.extract_strided_slice %17 {offsets = [12, 0], sizes = [4, 1], strides = [1, 1]} : vector<16x1xf32> to vector<4x1xf32>
    %24 = arith.addf %22, %23 : vector<4x1xf32>
    %cst_3 = arith.constant 0.001953125 : f32
    %25 = vector.broadcast %cst_3 : f32 to vector<4x1xf32>
    %26 = arith.mulf %24, %25 : vector<4x1xf32>
    %cst_4 = arith.constant 9.99999974E-6 : f32
    %27 = vector.broadcast %cst_4 : f32 to vector<4x1xf32>
    %28 = arith.addf %26, %27 : vector<4x1xf32>
    %29 = math.rsqrt %28 : vector<4x1xf32>
    %c0_5 = arith.constant 0 : index
    %c4 = arith.constant 4 : index
    %30 = vector.load %arg1[%c0_5, %c4] : memref<8x5xf32, #tpu.memory_space<vmem>>, vector<4x1xf32>
    %c4_6 = arith.constant 4 : index
    %c4_7 = arith.constant 4 : index
    %31 = vector.load %arg1[%c4_6, %c4_7] : memref<8x5xf32, #tpu.memory_space<vmem>>, vector<4x1xf32>
    %32 = arith.mulf %30, %29 : vector<4x1xf32>
    %33 = tpu.concatenate %32, %32, %32, %32 in 0 : vector<4x1xf32>, vector<4x1xf32>, vector<4x1xf32>, vector<4x1xf32> -> vector<16x1xf32>
    %34 = tpu.concatenate %31, %31, %31, %31 in 0 : vector<4x1xf32>, vector<4x1xf32>, vector<4x1xf32>, vector<4x1xf32> -> vector<16x1xf32>
    %35 = vector.broadcast %33 : vector<16x1xf32> to vector<16x128xf32>
    %36 = arith.mulf %14, %35 : vector<16x128xf32>
    %37 = vector.broadcast %34 : vector<16x1xf32> to vector<16x128xf32>
    %38 = arith.addf %36, %37 : vector<16x128xf32>
    %cst_8 = arith.constant 0.000000e+00 : f32
    %39 = vector.broadcast %cst_8 : f32 to vector<16x128xf32>
    %40 = arith.maximumf %38, %39 : vector<16x128xf32>
    %41 = vector.extract_strided_slice %40 {offsets = [0, 0], sizes = [4, 128], strides = [1, 1]} : vector<16x128xf32> to vector<4x128xf32>
    %42 = vector.extract_strided_slice %40 {offsets = [4, 0], sizes = [4, 128], strides = [1, 1]} : vector<16x128xf32> to vector<4x128xf32>
    %43 = arith.addf %41, %42 : vector<4x128xf32>
    %44 = vector.extract_strided_slice %40 {offsets = [8, 0], sizes = [4, 128], strides = [1, 1]} : vector<16x128xf32> to vector<4x128xf32>
    %45 = arith.addf %43, %44 : vector<4x128xf32>
    %46 = vector.extract_strided_slice %40 {offsets = [12, 0], sizes = [4, 128], strides = [1, 1]} : vector<16x128xf32> to vector<4x128xf32>
    %47 = arith.addf %45, %46 : vector<4x128xf32>
    %c0_9 = arith.constant 0 : index
    %c0_10 = arith.constant 0 : index
    %48 = vector.load %arg1[%c0_9, %c0_10] : memref<8x5xf32, #tpu.memory_space<vmem>>, vector<8x4xf32>
    %49 = vector.extract_strided_slice %48 {offsets = [0, 0], sizes = [8, 1], strides = [1, 1]} : vector<8x4xf32> to vector<8x1xf32>
    %50 = vector.extract_strided_slice %47 {offsets = [0, 0], sizes = [1, 128], strides = [1, 1]} : vector<4x128xf32> to vector<1x128xf32>
    %51 = vector.broadcast %49 : vector<8x1xf32> to vector<8x128xf32>
    %52 = vector.broadcast %50 : vector<1x128xf32> to vector<8x128xf32>
    %53 = arith.mulf %51, %52 : vector<8x128xf32>
    %54 = vector.extract_strided_slice %48 {offsets = [0, 1], sizes = [8, 1], strides = [1, 1]} : vector<8x4xf32> to vector<8x1xf32>
    %55 = vector.extract_strided_slice %47 {offsets = [1, 0], sizes = [1, 128], strides = [1, 1]} : vector<4x128xf32> to vector<1x128xf32>
    %56 = vector.broadcast %54 : vector<8x1xf32> to vector<8x128xf32>
    %57 = vector.broadcast %55 : vector<1x128xf32> to vector<8x128xf32>
    %58 = arith.mulf %56, %57 : vector<8x128xf32>
    %59 = arith.addf %53, %58 : vector<8x128xf32>
    %60 = vector.extract_strided_slice %48 {offsets = [0, 2], sizes = [8, 1], strides = [1, 1]} : vector<8x4xf32> to vector<8x1xf32>
    %61 = vector.extract_strided_slice %47 {offsets = [2, 0], sizes = [1, 128], strides = [1, 1]} : vector<4x128xf32> to vector<1x128xf32>
    %62 = vector.broadcast %60 : vector<8x1xf32> to vector<8x128xf32>
    %63 = vector.broadcast %61 : vector<1x128xf32> to vector<8x128xf32>
    %64 = arith.mulf %62, %63 : vector<8x128xf32>
    %65 = arith.addf %59, %64 : vector<8x128xf32>
    %66 = vector.extract_strided_slice %48 {offsets = [0, 3], sizes = [8, 1], strides = [1, 1]} : vector<8x4xf32> to vector<8x1xf32>
    %67 = vector.extract_strided_slice %47 {offsets = [3, 0], sizes = [1, 128], strides = [1, 1]} : vector<4x128xf32> to vector<1x128xf32>
    %68 = vector.broadcast %66 : vector<8x1xf32> to vector<8x128xf32>
    %69 = vector.broadcast %67 : vector<1x128xf32> to vector<8x128xf32>
    %70 = arith.mulf %68, %69 : vector<8x128xf32>
    %71 = arith.addf %65, %70 : vector<8x128xf32>
    %c0_11 = arith.constant 0 : index
    %c0_12 = arith.constant 0 : index
    %72 = vector.load %arg2[%c0_11, %c0_12] : memref<8x128xf32, #tpu.memory_space<vmem>>, vector<8x128xf32>
    tpu.vector_store %arg2[%c0_11, %c0_12], %71 {strides = array<i32>} : memref<8x128xf32, #tpu.memory_space<vmem>>, vector<8x128xf32>,
    return
  }
}

</mosaic_0001>

<bundles_post_ra>
// kernel: trans_block_forward.1
= control target key start
LH: loop header
LB: loop body
LE: loop exit
PB: predicated region body
PF: predicated region fallthrough
CT: control target
= control target key end

     0   :  { %v158_v2 = vmov 0   ;;  %vm30_vm0 = vcmask 1043456   ;;  %v159_v27 = vmov 4   ;;  %s160_s14 = smov 4   ;;  %v161_v33 = vmov 2   ;;  %s200_s0 = inlined_call_operand.vmem [shape: f32[16,128], index: 0, kind: input, shape index: {}]   ;;  %s201_s1 = inlined_call_operand.vmem [shape: f32[8,5], index: 1, kind: input, shape index: {}]   ;;  %s202_s2 = inlined_call_operand.vmem [shape: f32[8,128], index: 2, kind: output, shape index: {}]  }
   0x1   :  { %v11_v0 = vld [vmem:[%s200_s0] sm:$0xff]  ;;  %v12_v1 = vld [vmem:[%s200_s0 + $0x8] sm:$0xff]  ;;  %149 = vset.pattern.permute.xlu1 %v158_v2  ;;  %151 = vset.pattern.permute.xlu0 %v159_v27  ;;  %v162_v39 = vmov 1   ;;  %v163_v40 = vmov 3   ;;  %v103_v45 = vlaneseq }
   0x2   :  { %13 = vadd.xlane.f32.xlu0 %v11_v0  ;;  %v58_v28 = vld [vmem:[%s201_s1 + $0x4] sm:$0xf]  ;;  %v57_v34 = vld [vmem:[%s201_s1] sm:$0xf] }
   0x3   :  { %v69_v29 = vrot.slane %v58_v28, 4  ;;  %v97_v32 = vld [vmem:[%s201_s1] sm:$0xff]  ;;  %v104_v49 = vshrl.u32 %v103_v45, 7 }
   0x5   :  { %v71_v30 = vsel %vm30_vm0, %v58_v28, %v69_v29  ;;  %v105_v54 = vsub.s32 0, %v104_v49  ;;  %v114_v57 = vsub.s32 1, %v104_v49  ;;  %v124_v58 = vsub.s32 2, %v104_v49 }
   0x6   :  { %15 = vadd.xlane.f32.xlu0 %v12_v1  ;;  %v134_v61 = vsub.s32 3, %v104_v49 }
  0x8b   :  { %v14_v3 = vpop.xlane.xlu0 %13 }
  0x8c   :  { %v18_v4 = vrot.slane %v14_v3, 4 }
  0x8e   :  { %v20_v5 = vadd.f32 %v18_v4, %v14_v3 }
  0x8f   :  { %v16_v6 = vpop.xlane.xlu0 %15 }
  0x90   :  { %v21_v7 = vadd.f32 %v20_v5, %v16_v6  ;;  %v23_v8 = vrot.slane %v16_v6, 4 }
  0x92   :  { %v25_v9 = vadd.f32 %v23_v8, %v21_v7 }
  0x94   :  { %v26_v10 = vmul.f32 0.001953125, %v25_v9 }
  0x96   :  { %v28_v11 = vrot.slane %v26_v10, 4 }
  0x98   :  { %v31_v12 = vsel %vm30_vm0, %v26_v10, %v28_v11 }
  0x99   :  { %34 = vperm.xlu1 %149, %v31_v12  }
  0x9d   :  { %150 = vset.pattern.permute.xlu1 %v159_v27 }
 0x114   :  { %v35_v13 = vpop.permute.xlu1 %34 }
 0x115   :  { %v37_v14 = vsub.f32 %v11_v0, %v35_v13  ;;  %v38_v15 = vsub.f32 %v12_v1, %v35_v13 }
 0x117   :  { %v40_v16 = vmul.f32 %v38_v15, %v38_v15  ;;  %v39_v17 = vmul.f32 %v37_v14, %v37_v14 }
 0x119   :  { %43 = vadd.xlane.f32.xlu0 %v40_v16  ;;  %41 = vadd.xlane.f32.xlu1 %v39_v17 }
 0x12a   :  { %81 = vperm.xlu1 %150, %v71_v30  }
 0x12e   :  { %154 = vset.pattern.permute.xlu1 %v161_v33 }
 0x12f   :  { %119 = vperm.xlu1 %154, %v97_v32  }
 0x1a2   :  { %v42_v18 = vpop.xlane.xlu1 %41  ;;  %v44_v20 = vpop.xlane.xlu0 %43 }
 0x1a3   :  { %v46_v19 = vrot.slane %v42_v18, 4  ;;  %v51_v22 = vrot.slane %v44_v20, 4 }
 0x1a5   :  { %v48_v21 = vadd.f32 %v46_v19, %v42_v18 }
 0x1a6   :  { %v82_v42 = vpop.permute.xlu1 %81 }
 0x1a7   :  { %v49_v23 = vadd.f32 %v48_v21, %v44_v20 }
 0x1a9   :  { %v53_v24 = vadd.f32 %v51_v22, %v49_v23 }
 0x1aa   :  { %v120_v1 = vpop.permute.xlu1 %119 }
 0x1ab   :  { %v54_v25 = vmul.f32 0.001953125, %v53_v24 }
 0x1ad   :  { %v55_v26 = vadd.f32 1e-05, %v54_v25 }
 0x1af   :  { %156 = vrsqrt.f32 %v55_v26 }
 0x1bc   :  { %v157_v31 = vpop.eup %156 }
 0x1bd   :  { %60 = vrot.lane.b32.xlu0 %v157_v31, %s160_s14 }
 0x22f   :  { %v61_v35 = vpop.permute.xlu0 %60 }
 0x230   :  { %v63_v36 = vmul.f32 %v61_v35, %v57_v34 }
 0x232   :  { %v65_v37 = vrot.slane %v63_v36, 4 }
 0x234   :  { %v67_v38 = vsel %vm30_vm0, %v63_v36, %v65_v37 }
 0x235   :  { %74 = vperm.xlu0 %151, %v67_v38  }
 0x239   :  { %152 = vset.pattern.permute.xlu0 %v158_v2 }
 0x23a   :  { %100 = vperm.xlu0 %152, %v97_v32  }
 0x23e   :  { %153 = vset.pattern.permute.xlu0 %v162_v39 }
 0x23f   :  { %109 = vperm.xlu0 %153, %v97_v32  }
 0x243   :  { %155 = vset.pattern.permute.xlu0 %v163_v40 }
 0x244   :  { %129 = vperm.xlu0 %155, %v97_v32  }
 0x2b0   :  { %v75_v41 = vpop.permute.xlu0 %74 }
 0x2b1   :  { %v77_v43 = vmul.f32 %v75_v41, %v37_v14  ;;  %v78_v44 = vmul.f32 %v75_v41, %v38_v15 }
 0x2b3   :  { %v84_v46 = vadd.f32 %v82_v42, %v77_v43  ;;  %v85_v47 = vadd.f32 %v82_v42, %v78_v44 }
 0x2b5   :  { %v86_v48 = vmax.f32 %v84_v46, 0.0  ;;  %v101_v50 = vpop.permute.xlu0 %100  ;;  %v87_v51 = vmax.f32 %v85_v47, 0.0 }
 0x2b7   :  { %v89_v52 = vrot.slane %v86_v48, 4  ;;  %v94_v56 = vrot.slane %v87_v51, 4 }
 0x2b9   :  { %v91_v53 = vadd.f32 %v89_v52, %v86_v48 }
 0x2ba   :  { %v110_v59 = vpop.permute.xlu0 %109 }
 0x2bb   :  { %v92_v55 = vadd.f32 %v91_v53, %v87_v51 }
 0x2bd   :  { %v96_v60 = vadd.f32 %v94_v56, %v92_v55 }
 0x2bf   :  { %v106_v62 = vrot.slane %v96_v60, %v105_v54  ;;  %v115_v63 = vrot.slane %v96_v60, %v114_v57  ;;  %v125_v0 = vrot.slane %v96_v60, %v124_v58  ;;  %v135_v4 = vrot.slane %v96_v60, %v134_v61  ;;  %v130_v5 = vpop.permute.xlu0 %129 }
 0x2c1   :  { %v107_v2 = vmul.f32 %v106_v62, %v101_v50  ;;  %v116_v3 = vmul.f32 %v115_v63, %v110_v59  ;;  %v126_v7 = vmul.f32 %v125_v0, %v120_v1  ;;  %v136_v8 = vmul.f32 %v135_v4, %v130_v5 }
 0x2c3   :  { %v117_v6 = vadd.f32 %v116_v3, %v107_v2 }
 0x2c5   :  { %v127_v9 = vadd.f32 %v126_v7, %v117_v6 }
 0x2c7   :  { %v137_v10 = vadd.f32 %v136_v8, %v127_v9 }
 0x2c9   :  { %138 = vst [vmem:[%s202_s2] sm:$0xff] %v137_v10 }

</bundles_post_ra>
